<compile_context>
chip_gen: v5e
topology: v5e:2x2
jax: 0.10.0
libtpu: 0.0.40
codegen_flags: <defaults>
</compile_context>

<pallas_src>
import functools

import jax
import jax.numpy as jnp
from jax import lax
from jax.experimental import pallas as pl
from jax.experimental.pallas import tpu as pltpu


# ------------------------------ linear kernel -------------------------------

def _linear_kernel(x_ref, w_ref, b_ref, o_ref, acc_ref):
    k = pl.program_id(2)

    @pl.when(k == 0)
    def _init():
        acc_ref[...] = jnp.zeros(acc_ref.shape, acc_ref.dtype)

    # bf16 MXU operands, f32 accumulation.
    acc_ref[...] += jnp.dot(x_ref[...], w_ref[...],
                            preferred_element_type=jnp.float32)

    @pl.when(k == pl.num_programs(2) - 1)
    def _finalize():
        o_ref[...] = (acc_ref[...] + b_ref[...]).astype(o_ref.dtype)


def linear(x2d, w, b, *, out_dtype, block_m=256, block_n=256, block_k=512):
    """o = x2d @ w + b, tiled over (rows, out-cols, K) with f32 accumulation.

    x2d, w are expected in bf16 (cast once on the host); b is f32 and is
    added after the f32 accumulation.
    """
    M, K = x2d.shape
    Kw, Nout = w.shape
    assert K == Kw
    bm = min(block_m, M)
    bn = min(block_n, Nout)
    bk = min(block_k, K)
    assert M % bm == 0 and Nout % bn == 0 and K % bk == 0
    grid = (M // bm, Nout // bn, K // bk)
    return pl.pallas_call(
        _linear_kernel,
        grid=grid,
        in_specs=[pl.BlockSpec((bm, bk), lambda i, j, k: (i, k)),
                  pl.BlockSpec((bk, bn), lambda i, j, k: (k, j)),
                  pl.BlockSpec((1, bn), lambda i, j, k: (0, j))],
        out_specs=pl.BlockSpec((bm, bn), lambda i, j, k: (i, j)),
        out_shape=jax.ShapeDtypeStruct((M, Nout), out_dtype),
        scratch_shapes=[pltpu.VMEM((bm, bn), jnp.float32)],
        compiler_params=pltpu.CompilerParams(
            dimension_semantics=("parallel", "parallel", "arbitrary")),
        cost_estimate=pl.CostEstimate(
            flops=2 * M * K * Nout,
            transcendentals=0,
            bytes_accessed=2 * (M * K + K * Nout * (M // bm) + M * Nout)),
    )(x2d, w, b.reshape(1, Nout))


# ------------------------------- RoPE kernel ---------------------------------

def _rope_kernel(qk_ref, cos_ref, sin_ref, perm_ref, o_ref):
    # Interleaved (torch.view_as_complex style) RoPE on one (rows, D) head
    # tile:  out[2i] = x[2i]*cos_i - x[2i+1]*sin_i
    #        out[2i+1] = x[2i+1]*cos_i + x[2i]*sin_i
    # cos_ref repeats each cos per pair; sin_ref carries [-sin, +sin, ...].
    # The adjacent-pair swap is a constant (D, D) permutation matmul (exact in
    # f32 accumulation); this kernel runs once per token so it is bandwidth-
    # bound, not MXU-bound.
    x = qk_ref[...].astype(jnp.float32)
    x_swap = jnp.dot(qk_ref[...], perm_ref[...],
                     preferred_element_type=jnp.float32)
    o_ref[...] = (x * cos_ref[...] + x_swap * sin_ref[...]).astype(o_ref.dtype)


def rope_rotate_qk(qkv, cos_full, sin_alt, *, B, N, H, D, block_rows=256):
    """Rotate the q and k head columns of the (B*N, 3*H*D) qkv slab once.

    Returns a (B*N, 2*H*D) bf16 slab: rotated q in columns [h*D,(h+1)*D) and
    rotated k in columns [C + h*D, ...).  V stays in the original qkv slab.
    """
    M = B * N
    C = H * D
    assert qkv.shape == (M, 3 * C)
    br = min(block_rows, M)
    assert M % br == 0

    # adjacent-pair swap permutation: perm[2i, 2i+1] = perm[2i+1, 2i] = 1
    di = jnp.arange(D)[:, None]
    dj = jnp.arange(D)[None, :]
    perm = (dj == (di + 1 - 2 * (di % 2))).astype(jnp.bfloat16)

    grid = (M // br, 2 * H)   # column block j: q head j for j<H, k head j-H
    return pl.pallas_call(
        _rope_kernel,
        grid=grid,
        in_specs=[pl.BlockSpec((br, D), lambda i, j: (i, j)),   # q/k head tile
                  pl.BlockSpec((br, D), lambda i, j: (i, 0)),   # cos (paired)
                  pl.BlockSpec((br, D), lambda i, j: (i, 0)),   # signed sin
                  pl.BlockSpec((D, D), lambda i, j: (0, 0))],   # pair-swap perm
        out_specs=pl.BlockSpec((br, D), lambda i, j: (i, j)),
        out_shape=jax.ShapeDtypeStruct((M, 2 * C), qkv.dtype),
        compiler_params=pltpu.CompilerParams(
            dimension_semantics=("parallel", "parallel")),
    )(qkv, cos_full, sin_alt, perm)


# --------------------------- flash attention kernel --------------------------

def _flash_attn_kernel(q_ref, k_ref, v_ref, o_ref, m_scr, l_scr, acc_scr):
    ki = pl.program_id(3)

    @pl.when(ki == 0)
    def _init():
        m_scr[...] = jnp.full(m_scr.shape, -jnp.inf, m_scr.dtype)
        l_scr[...] = jnp.zeros(l_scr.shape, l_scr.dtype)
        acc_scr[...] = jnp.zeros(acc_scr.shape, acc_scr.dtype)

    # (tq, tk) score tile; q is pre-rotated and pre-scaled, k pre-rotated.
    # q @ k^T expressed as a dot_general so no transpose is materialized.
    s = lax.dot_general(q_ref[...], k_ref[...], (((1,), (1,)), ((), ())),
                        preferred_element_type=jnp.float32)

    m_prev = m_scr[...]
    m_new = jnp.maximum(m_prev, jnp.max(s, axis=-1, keepdims=True))
    alpha = jnp.exp(m_prev - m_new)
    p = jnp.exp(s - m_new)
    l_scr[...] = alpha * l_scr[...] + jnp.sum(p, axis=-1, keepdims=True)
    acc_scr[...] = alpha * acc_scr[...] + jnp.dot(
        p.astype(jnp.bfloat16), v_ref[...], preferred_element_type=jnp.float32)
    m_scr[...] = m_new

    @pl.when(ki == pl.num_programs(3) - 1)
    def _finalize():
        # approx=True reciprocal (~2^-12 rel error) is fine for inference;
        # switch to approx=False if this kernel is reused for training.
        o_ref[...] = (acc_scr[...] *
                      pl.reciprocal(l_scr[...], approx=True)).astype(o_ref.dtype)


def flash_attention(qk_rot, qkv, *, B, N, H, D, block_q=256, block_k=256):
    """qk_rot: (B*N, 2*H*D) pre-rotated/pre-scaled q and k (bf16).
    qkv:    (B*N, 3*H*D) qkv activation (v read from its last H*D columns).
    Returns o: (B*N, H*D) bf16 with head h occupying columns [h*D, (h+1)*D).
    """
    C = H * D
    block_q = min(block_q, N)
    block_k = min(block_k, N)
    assert N % block_q == 0 and N % block_k == 0
    # TODO(synk): for D < 128, process 2+ heads per grid step so lane /
    # contraction widths stay full; current layout requires D % 128 == 0.
    assert D % 128 == 0
    nq, nk = N // block_q, N // block_k
    grid = (B, H, nq, nk)

    def q_map(b, h, qi, ki):
        return (b * nq + qi, h)

    def k_map(b, h, qi, ki):
        return (b * nk + ki, H + h)

    def v_map(b, h, qi, ki):
        return (b * nk + ki, 2 * H + h)

    def o_map(b, h, qi, ki):
        return (b * nq + qi, h)

    # TODO(synk): if an xprof trace shows exposed DMA at the start of each ki
    # sweep, set pipeline_mode=pl.Buffered(3) on the k/v BlockSpecs.
    return pl.pallas_call(
        _flash_attn_kernel,
        grid=grid,
        in_specs=[
            pl.BlockSpec((block_q, D), q_map),    # rotated+scaled q head tile
            pl.BlockSpec((block_k, D), k_map),    # rotated k head tile
            pl.BlockSpec((block_k, D), v_map),    # v head tile (from qkv slab)
        ],
        out_specs=pl.BlockSpec((block_q, D), o_map),
        out_shape=jax.ShapeDtypeStruct((B * N, C), qkv.dtype),
        scratch_shapes=[
            pltpu.VMEM((block_q, 1), jnp.float32),   # running max
            pltpu.VMEM((block_q, 1), jnp.float32),   # running sum
            pltpu.VMEM((block_q, D), jnp.float32),   # output accumulator
        ],
        compiler_params=pltpu.CompilerParams(
            dimension_semantics=("parallel", "parallel", "parallel",
                                 "arbitrary")),
        cost_estimate=pl.CostEstimate(
            flops=4 * B * H * N * N * D,
            transcendentals=B * H * N * N,
            bytes_accessed=2 * (B * N * C            # q (resident per sweep)
                                + 2 * nq * B * N * C # k, v re-streamed nq times
                                + B * N * C)),       # o
    )(qk_rot, qk_rot, qkv)


# ------------------------------ module forward ------------------------------

def attention_forward(x, params, num_heads,
                      seq_len=None, cu_seqlens=None, max_seqlen=None,
                      cu_seqlens_k=None, max_seqlen_k=None,
                      rotary_pos_emb=None, incremental_state=None,
                      block_q=256, block_k=256):
    """Attention.forward, fused_attn=True / nopadding=True / eval (dropout=0).

    Assumes cu_seqlens describe uniform full-length sequences [0, N, 2N, ...]
    (each batch row attends non-causally to its full length), matching
    flash_attn_varlen_func with those cu_seqlens.  q_norm / k_norm are
    nn.Identity (qk_norm=False).
    # TODO(synk): ragged cu_seqlens (true varlen) masking and the
    # incremental_state KV-cache concat path are not implemented.
    """
    B, N, C = x.shape
    H = num_heads
    D = C // H
    scale = D ** (-0.5)

    # Fold the softmax scale into the q columns of the qkv projection (host,
    # once per call) and cast weights/activations to bf16 once.
    col_scale = jnp.concatenate(
        [jnp.full((C,), scale, jnp.float32), jnp.ones((2 * C,), jnp.float32)])
    w_qkv = (params["w_qkv"].astype(jnp.float32) * col_scale[None, :]
             ).astype(jnp.bfloat16)
    b_qkv = (params["b_qkv"].astype(jnp.float32) * col_scale)
    w_proj = params["w_proj"].astype(jnp.bfloat16)
    b_proj = params["b_proj"].astype(jnp.float32)

    x2d = x.reshape(B * N, C).astype(jnp.bfloat16)

    # qkv projection -> (B*N, 3*C) bf16 slab in the natural layout so the
    # downstream kernels DMA per-head tiles directly (no host transposes).
    qkv = linear(x2d, w_qkv, b_qkv, out_dtype=jnp.bfloat16)

    # RoPE tables (interleaved complex layout).
    if rotary_pos_emb is not None:
        cos, sin = rotary_pos_emb                       # each (B, N, D//2)
        cos = cos.astype(jnp.float32)
        sin = sin.astype(jnp.float32)
        cos_full = jnp.repeat(cos, 2, axis=-1).reshape(B * N, D)
        sin_alt = jnp.stack([-sin, sin], axis=-1).reshape(B * N, D)
    else:
        cos_full = jnp.ones((B * N, D), jnp.float32)    # identity rotation
        sin_alt = jnp.zeros((B * N, D), jnp.float32)

    # Rotate q and k exactly once (hoisted out of the attention inner loop).
    qk_rot = rope_rotate_qk(qkv, cos_full, sin_alt, B=B, N=N, H=H, D=D)

    o = flash_attention(qk_rot, qkv, B=B, N=N, H=H, D=D,
                        block_q=block_q, block_k=block_k)

    out = linear(o, w_proj, b_proj, out_dtype=jnp.float32).reshape(B, N, C)
    return out.astype(x.dtype)  # proj_drop / attn_drop are identity in eval


# ----------------------------- pure-JAX reference ---------------------------

def attention_reference(x, params, num_heads, rotary_pos_emb=None):
    B, N, C = x.shape
    H = num_heads
    D = C // H
    scale = D ** (-0.5)
    qkv = x.reshape(B * N, C) @ params["w_qkv"] + params["b_qkv"]
    qkv = qkv.reshape(B, N, 3, H, D)
    q, k, v = qkv[:, :, 0], qkv[:, :, 1], qkv[:, :, 2]
    if rotary_pos_emb is not None:
        cos, sin = rotary_pos_emb

        def rot(t):
            t5 = t.reshape(B, N, H, D // 2, 2)
            tr, ti = t5[..., 0], t5[..., 1]
            c = cos[:, :, None, :]
            s = sin[:, :, None, :]
            return jnp.stack([tr * c - ti * s, tr * s + ti * c],
                             axis=-1).reshape(B, N, H, D)

        q, k = rot(q), rot(k)
    qh, kh, vh = (t.transpose(0, 2, 1, 3) for t in (q, k, v))
    att = jnp.einsum("bhqd,bhkd->bhqk", qh, kh) * scale
    att = jax.nn.softmax(att, axis=-1)
    oh = jnp.einsum("bhqk,bhkd->bhqd", att, vh)
    o = oh.transpose(0, 2, 1, 3).reshape(B * N, C)
    return (o @ params["w_proj"] + params["b_proj"]).reshape(B, N, C)


# ----------------------------------- main -----------------------------------

if __name__ == "__main__":
    # small but TPU-friendly shapes: head_dim = 128 (full lane width).
    B, N, dim, H = 2, 256, 256, 2
    D = dim // H

    key = jax.random.PRNGKey(0)
    kx, kq, kp, kb = jax.random.split(key, 4)
    x = jax.random.normal(kx, (B, N, dim), jnp.float32)

    params = {
        "w_qkv": 0.05 * jax.random.normal(kq, (dim, 3 * dim), jnp.float32),
        "b_qkv": jnp.zeros((3 * dim,), jnp.float32),          # qkv_bias=False
        "w_proj": 0.05 * jax.random.normal(kp, (dim, dim), jnp.float32),
        "b_proj": 0.01 * jax.random.normal(kb, (dim,), jnp.float32),
    }

    # rotary_pos_emb: torch passes complex freqs_cis (B, N, D//2); here (cos, sin)
    pos = jnp.arange(N, dtype=jnp.float32)
    inv_freq = 1.0 / (10000.0 ** (jnp.arange(0, D, 2, dtype=jnp.float32) / D))
    ang = pos[:, None] * inv_freq[None, :]                    # (N, D//2)
    cos = jnp.broadcast_to(jnp.cos(ang)[None], (B, N, D // 2))
    sin = jnp.broadcast_to(jnp.sin(ang)[None], (B, N, D // 2))

    cu = jnp.arange(0, (B + 1) * N, N, dtype=jnp.int32)       # [0, N, 2N]
    out = attention_forward(
        x, params, H,
        seq_len=jnp.full((B,), N, jnp.int32),
        cu_seqlens=cu, max_seqlen=N,
        cu_seqlens_k=cu, max_seqlen_k=N,
        rotary_pos_emb=(cos, sin),
    )
    jax.block_until_ready(out)

    ref = attention_reference(x, params, H, rotary_pos_emb=(cos, sin))
    assert out.shape == (B, N, dim), out.shape
    max_err = float(jnp.max(jnp.abs(out - ref)))
    # bf16 activations/weights end-to-end -> compare at inference tolerance.
    assert jnp.allclose(out, ref, atol=2.5e-2, rtol=2.5e-2), max_err

    print("KERNEL_OK")
</pallas_src>

<mosaic_0001>
module attributes {stable_mosaic.version = 11 : i64} {
  func.func @_linear_kernel(%arg0: i32, %arg1: i32, %arg2: i32, %arg3: memref<256x256xbf16, #tpu.memory_space<vmem>>, %arg4: memref<256x256xbf16, #tpu.memory_space<vmem>>, %arg5: memref<1x256xf32, #tpu.memory_space<vmem>>, %arg6: memref<256x256xbf16, #tpu.memory_space<vmem>>, %arg7: memref<256x256xf32, #tpu.memory_space<vmem>>) attributes {dimension_semantics = [#tpu.dimension_semantics<parallel>, #tpu.dimension_semantics<parallel>, #tpu.dimension_semantics<arbitrary>], iteration_bounds = array<i64: 2, 3, 1>, scalar_prefetch = 0 : i64, scratch_operands = 1 : i64, tpu.core_type = #tpu.core_type<tc>, window_params = [{transform_indices = @transform_0, window_bounds = array<i64: 256, 256>}, {transform_indices = @transform_1, window_bounds = array<i64: 256, 256>}, {transform_indices = @transform_2, window_bounds = array<i64: 1, 256>}, {transform_indices = @transform_3, window_bounds = array<i64: 256, 256>}]} {
    %c0_i32 = arith.constant 0 : i32
    %0 = arith.cmpi eq, %arg2, %c0_i32 : i32
    %1 = arith.extui %0 : i1 to i32
    %c0_i32_0 = arith.constant 0 : i32
    %2 = arith.cmpi ne, %1, %c0_i32_0 : i32
    scf.if %2 {
      %cst_10 = arith.constant 0.000000e+00 : f32
      %12 = vector.broadcast %cst_10 : f32 to vector<256x256xf32>
      %c0_11 = arith.constant 0 : index
      %c0_12 = arith.constant 0 : index
      %13 = vector.load %arg7[%c0_11, %c0_12] : memref<256x256xf32, #tpu.memory_space<vmem>>, vector<256x256xf32>
      tpu.vector_store %arg7[%c0_11, %c0_12], %12 {strides = array<i32>} : memref<256x256xf32, #tpu.memory_space<vmem>>, vector<256x256xf32>,
    } else {
    }
    %c0 = arith.constant 0 : index
    %c0_1 = arith.constant 0 : index
    %3 = vector.load %arg7[%c0, %c0_1] : memref<256x256xf32, #tpu.memory_space<vmem>>, vector<256x256xf32>
    %c0_2 = arith.constant 0 : index
    %c0_3 = arith.constant 0 : index
    %4 = vector.load %arg3[%c0_2, %c0_3] : memref<256x256xbf16, #tpu.memory_space<vmem>>, vector<256x256xbf16>
    %c0_4 = arith.constant 0 : index
    %c0_5 = arith.constant 0 : index
    %5 = vector.load %arg4[%c0_4, %c0_5] : memref<256x256xbf16, #tpu.memory_space<vmem>>, vector<256x256xbf16>
    %cst = arith.constant dense<0.000000e+00> : vector<256x256xf32>
    %6 = tpu.matmul %4, %5, %cst {dimension_numbers = #tpu.dot_dimension_numbers<[1], [0], [0], [1], [0, 0, 1, 1], [], []>} : vector<256x256xbf16>, vector<256x256xbf16>, vector<256x256xf32> -> vector<256x256xf32>
    %7 = arith.addf %3, %6 : vector<256x256xf32>
    %c0_6 = arith.constant 0 : index
    %c0_7 = arith.constant 0 : index
    %8 = vector.load %arg7[%c0_6, %c0_7] : memref<256x256xf32, #tpu.memory_space<vmem>>, vector<256x256xf32>
    tpu.vector_store %arg7[%c0_6, %c0_7], %7 {strides = array<i32>} : memref<256x256xf32, #tpu.memory_space<vmem>>, vector<256x256xf32>,
    %c0_i32_8 = arith.constant 0 : i32
    %9 = arith.cmpi eq, %arg2, %c0_i32_8 : i32
    %10 = arith.extui %9 : i1 to i32
    %c0_i32_9 = arith.constant 0 : i32
    %11 = arith.cmpi ne, %10, %c0_i32_9 : i32
    scf.if %11 {
      %c0_10 = arith.constant 0 : index
      %c0_11 = arith.constant 0 : index
      %12 = vector.load %arg7[%c0_10, %c0_11] : memref<256x256xf32, #tpu.memory_space<vmem>>, vector<256x256xf32>
      %c0_12 = arith.constant 0 : index
      %c0_13 = arith.constant 0 : index
      %13 = vector.load %arg5[%c0_12, %c0_13] : memref<1x256xf32, #tpu.memory_space<vmem>>, vector<1x256xf32>
      %14 = vector.broadcast %13 : vector<1x256xf32> to vector<256x256xf32>
      %15 = arith.addf %12, %14 : vector<256x256xf32>
      %16 = arith.truncf %15 : vector<256x256xf32> to vector<256x256xbf16>
      %c0_14 = arith.constant 0 : index
      %c0_15 = arith.constant 0 : index
      %17 = vector.load %arg6[%c0_14, %c0_15] : memref<256x256xbf16, #tpu.memory_space<vmem>>, vector<256x256xbf16>
      tpu.vector_store %arg6[%c0_14, %c0_15], %16 {strides = array<i32>} : memref<256x256xbf16, #tpu.memory_space<vmem>>, vector<256x256xbf16>,
    } else {
    }
    return
  }
  func.func @transform_0(%arg0: i32, %arg1: i32, %arg2: i32) -> (i32, i32) {
    %c0_i32 = arith.constant 0 : i32
    return %arg0, %arg2 : i32, i32
  }
  func.func @transform_1(%arg0: i32, %arg1: i32, %arg2: i32) -> (i32, i32) {
    %c0_i32 = arith.constant 0 : i32
    return %arg2, %arg1 : i32, i32
  }
  func.func @transform_2(%arg0: i32, %arg1: i32, %arg2: i32) -> (i32, i32) {
    %c0_i32 = arith.constant 0 : i32
    %c0_i32_0 = arith.constant 0 : i32
    return %c0_i32, %arg1 : i32, i32
  }
  func.func @transform_3(%arg0: i32, %arg1: i32, %arg2: i32) -> (i32, i32) {
    %c0_i32 = arith.constant 0 : i32
    return %arg0, %arg1 : i32, i32
  }
}

</mosaic_0001>

<bundles_post_ra>
// kernel: tpu_custom_call.1
= control target key start
LH: loop header
LB: loop body
LE: loop exit
PB: predicated region body
PF: predicated region fallthrough
CT: control target
= control target key end

     0   :  { %s2951_s0 = inlined_call_operand.hbm [shape: bf16[512,256], index: 0, kind: input, shape index: {}]   ;;  %s2952_s1 = inlined_call_operand.hbm [shape: bf16[256,768], index: 1, kind: input, shape index: {}]   ;;  %s2953_s2 = inlined_call_operand.hbm [shape: f32[1,768], index: 2, kind: input, shape index: {}]   ;;  %s2954_s3 = inlined_call_operand.hbm [shape: bf16[512,768], index: 3, kind: output, shape index: {}]  }
   0x1   :  { %2966 = sst [smem:[#allocation25_spill]] %s2952_s1 }
   0x2   :  { %2967 = sst [smem:[#allocation26_spill]] %s2954_s3 }
   0x3   :  { %8 = vsyncpa [#allocation4], 0 }
   0x4   :  { %10 = vsyncpa [#allocation4 + $0x1], 0 }
   0x5   :  { %11 = vsyncpa [#allocation7], 0 }
   0x6   :  { %13 = vsyncpa [#allocation7 + $0x1], 0 }
   0x7   :  { %14 = vsyncpa [#allocation5], 0 }
   0x8   :  { %16 = vsyncpa [#allocation5 + $0x1], 0  ;;  %s2425_s12 = smov 0   ;;  %s2427_s13 = smov 0  }
   0x9   :  { %s2429_s14 = smov 0   ;;  %s2431_s15 = smov 0  }
   0xa   :  { %s2433_s16 = smov 0   ;;  %s2435_s17 = smov 0  }
   0xb   :  { %s2437_s18 = smov 0   ;;  %s2439_s19 = smov 0  }
   0xc   :  { %s2441_s20 = smov 0   ;;  %s2443_s21 = smov 0  }
   0xd   :  { %s2445_s22 = smov 0   ;;  %s2447_s23 = smov 0  }
   0xe   :  { %s2449_s24 = smov 0   ;;  %s2451_s25 = smov 0  }
   0xf LB: > { %2968 = sst [smem:[#allocation13_spill]] %s2345_s12  ;;  %s37_s26 = sadd.s32 1, %s2389_s23  ;;  %s2397_s25 = sphi %s2451_s25, %s22_s25   ;;  %s2393_s24 = sphi %s2449_s24, %s3006_s24   ;;  %s2389_s23 = sphi %s2447_s23, %s3015_s23   ;;  %s2385_s22 = sphi %s2445_s22, %s3004_s22   ;;  %s2381_s21 = sphi %s2443_s21, %s3014_s21   ;;  %s2377_s20 = sphi %s2441_s20, %s3003_s20   ;;  %s2373_s19 = sphi %s2439_s19, %s3013_s19   ;;  %s2369_s18 = sphi %s2437_s18, %s3012_s18   ;;  %s2365_s17 = sphi %s2435_s17, %s3011_s17   ;;  %s2361_s16 = sphi %s2433_s16, %s3010_s16   ;;  %s2357_s15 = sphi %s2431_s15, %s3009_s15   ;;  %s2353_s14 = sphi %s2429_s14, %s3000_s14   ;;  %s2349_s13 = sphi %s2427_s13, %s3008_s13   ;;  %s2345_s12 = sphi %s2425_s12, %s3007_s12  }
  0x10   : > { %2969 = sst [smem:[#allocation14_spill]] %s2353_s14  ;;  %p58_p0 = scmp.eq.s32.totalorder %s2397_s25, 0 }
  0x11   : > { %2970 = sst [smem:[#allocation15_spill]] %s2377_s20  ;;  %p2499_p1 = scmp.ge.s32.totalorder %s37_s26, 3 }
  0x12   : > { %2971 = sst [smem:[#allocation16_spill]] %s2381_s21  ;;  %p85_p2 = scmp.ne.s32.totalorder %s2365_s17, %s2361_s16 }
  0x13   : > { %2972 = sst [smem:[#allocation17_spill]] %s2385_s22  ;;  %p91_p3 = scmp.ne.s32.totalorder %s2361_s16, %s2357_s15 }
  0x14   : > { %2973 = sst [smem:[#allocation18_spill]] %s2393_s24  ;;  %p2037_p4 = scmp.lt.s32.totalorder %s2397_s25, 6 }
  0x15   : > { %p87_p5 = por %p85_p2, %p58_p0  ;;  %s194_s29 = sand.u32 1, %s2397_s25  }
  0x16   : > { %s2955_s30 = sand.u32 1, %s2365_s17   ;;  %s1949_s5 = sshll.u32 %s2389_s23, 3 }
  0x17   : > { %s1674_s4 = sshll.u32 %s2955_s30, 8  ;;  %s2975_s1 = sld [smem:[#allocation25_spill]] }
  0x18   : > { %s198_s10 = scalar_lea.vmem [#allocation6], %s1674_s4  ;;  %p2521_p6 = pnand %p2037_p4, %p87_p5 }
  0x19   : > { %s209_s11 = sshll.u32 %s198_s10, 4  ;;  %p1679_p7 = scmp.ge.s32.totalorder %s2397_s25, 1  ;;  %s210_s11 = int_to_ptr.vmem [resolvable:$true] %s209_s11 }
  0x1a   : > { %p236_p8 = scmp.lt.s32.totalorder %s2397_s25, 7  ;;  %s2527_s4 = scalar_lea.sflag [#allocation7], %s194_s29 }
  0x1b   : > { %s2956_s6 = smov 128   ;;  %s2957_s7 = smov 8  }
  0x1c   : > { %p2534_p9 = pnand %p1679_p7, %p236_p8  ;;  %s2539_s10 = sadd.s32 4294967295, %s2397_s25  }
  0x1d   : > { %s206_s8 = scalar_lea.hbm %s2975_s1, %s1949_s5  ;;  %s2399_s5 = smov 384  }
  0x1e   : > { %s207_s9 = sshll.u32 %s206_s8, 4  ;;  %s1667_s29 = sadd.s32 4294967294, %s2397_s25   ;;  %s208_s9 = int_to_ptr.hbm [resolvable:$true] %s207_s9 }
  0x1f   : > { %2029 = dma.hbm_to_vmem [thread:$0]  (!%p2521_p6), %s208_s9, 4096, %s210_s11, %s2527_s4, %s2399_s5, %s2956_s6, %s2957_s7  }
  0x20   : > { %s3017_s26 = smov (%p2499_p1, %s37_s26), 0  ;;  %s41_s28 = sadd.s32 1, %s2393_s24 }
  0x21   : > { %2978 = sst [smem:[#allocation19_spill]] %s3017_s26  ;;  %s50_s9 = sadd.s32 1, %s2377_s20 }
  0x22   : > { %s3019_s28 = smov (!%p2499_p1, %s41_s28), %s2393_s24  ;;  %p57_p10 = scmp.ne.s32.totalorder %s2377_s20, %s2373_s19 }
  0x23   : > { %p63_p11 = scmp.ne.s32.totalorder %s2373_s19, %s2369_s18  ;;  %p43_p12 = scmp.ge.s32.totalorder %s3019_s28, 2 }
  0x24   : > { %p64_p13 = scmp.eq.s32.totalorder %s2539_s10, 0  ;;  %p2560_p2 = por %p58_p0, %p57_p10 }
  0x25   : > { %s74_s5 = ssub.s32 %s2389_s23, %s3017_s26  ;;  %s3021_s28 = smov (%p43_p12, %s3019_s28), 0 }
  0x26   : > { %2980 = sst [smem:[#allocation20_spill]] %s3021_s28  ;;  %p2568_p1 = por %p64_p13, %p63_p11 }
  0x27   : > { %p76_p5 = scmp.eq.s32.totalorder %s74_s5, 0  ;;  %s45_s18 = ssub.s32 %s2393_s24, %s3021_s28 }
  0x28   : > { %p2577_p7 = por %p91_p3, %p64_p13  ;;  %p48_p0 = scmp.eq.s32.totalorder %s45_s18, 0 }
  0x29   : > { %s129_s7 = sor.u32 %s74_s5, %s45_s18  ;;  %s2983_s1 = sadd.s32 1, %s2365_s17 }
  0x2a   : > { %s2584_s26 = scalar_select %p76_p5, %s2365_s17, %s2983_s1  }
  0x2b   : > { %s2587_s3 = scalar_select %p48_p0, %s2377_s20, %s50_s9  }
  0x2c   : > { %2984 = sst [smem:[#allocation21_spill]] %s2584_s26  ;;  %p130_p8 = scmp.eq.s32.totalorder %s129_s7, 0 }
  0x2d   : > { %2985 = sst [smem:[#allocation22_spill]] %s2587_s3  ;;  %s132_s21 = sadd.s32 1, %s2353_s14 }
  0x2e   : > { %p142_p10 = scmp.ne.s32.totalorder %s2353_s14, %s2349_s13  ;;  %p143_p11 = scmp.eq.s32.totalorder %s2539_s10, 5 }
  0x2f   : > { %s2594_s15 = scalar_select %p130_p8, %s2353_s14, %s132_s21  }
  0x30   : > { %p2596_p3 = por %p143_p11, %p142_p10  ;;  %p148_p12 = scmp.ne.s32.totalorder %s2349_s13, %s2345_s12 }
  0x31   : > { %2986 = sst [smem:[#allocation23_spill]] %s2594_s15  ;;  %p149_p13 = scmp.eq.s32.totalorder %s1667_s29, 5 }
  0x32   : > { %s169_s1 = sand.u32 1, %s2377_s20   ;;  %s1948_s7 = sshll.u32 %s2393_s24, 8 }
  0x33   : > { %s1670_s5 = sshll.u32 %s169_s1, 8  ;;  %p2603_p5 = por %p149_p13, %p148_p12 }
  0x34   : > { %s173_s18 = scalar_lea.vmem [#allocation3], %s1670_s5  ;;  %s181_s21 = scalar_lea.hbm %s2951_s0, %s1948_s7 }
  0x35   : > { %s2988_s9 = scalar_select %p2603_p5, 1, 0 }
  0x36   : > { %s184_s3 = sshll.u32 %s173_s18, 4  ;;  %s182_s15 = sshll.u32 %s181_s21, 4  ;;  %s185_s3 = int_to_ptr.vmem [resolvable:$true] %s184_s3  ;;  %s183_s15 = int_to_ptr.hbm [resolvable:$true] %s182_s15 }
  0x37   : > { %2989 = sst [smem:[#allocation24_spill]] %s2988_s9  ;;  %p2024_p0 = pnand %p2037_p4, %p2560_p2 }
  0x38   : > { %s2990_s29 = sand.u32 1, %s2365_s17   ;;  %s170_s14 = scalar_lea.sflag [#allocation4], %s169_s1 }
  0x39   : > { %s1677_s20 = sshll.u32 %s2990_s29, 1  ;;  %s2991_s12 = smov 8  }
  0x3a   : > { %s2992_s9 = smov 128   ;;  %s1678_s5 = sshll.u32 %s2389_s23, 1 }
  0x3b   : > { %2026 = dma.hbm_to_vmem [thread:$0]  (!%p2024_p0), %s183_s15, 4096, %s185_s3, %s170_s14, %s2992_s9, %s2992_s9, %s2991_s12  }
  0x3c   : > { %s223_s18 = scalar_lea.vmem [#allocation8], %s1677_s20  ;;  %s227_s7 = scalar_lea.hbm %s2953_s2, %s1678_s5 }
  0x3d   : > { %s231_s24 = sshll.u32 %s223_s18, 4  ;;  %s229_s21 = sshll.u32 %s227_s7, 4  ;;  %s232_s24 = int_to_ptr.vmem [resolvable:$true] %s231_s24  ;;  %s230_s21 = int_to_ptr.hbm [resolvable:$true] %s229_s21 }
  0x3e   : > { %2032 = dma.hbm_to_vmem [thread:$0]  (!%p2521_p6), %s230_s21, 32, %s232_s24, %s2527_s4  }
  0x3f   : > { %240 = sbr.rel (%p2534_p9) target bundleno = 501 (0x1f5), region = 32  ;;  %s242_s11 = sand.u32 (!%p2534_p9), 1, %s2373_s19  }
  0x40   : > { %s1680_s1 = sshll.u32 (!%p2534_p9), %s242_s11, 8  ;;  %s243_s3 = scalar_lea.sflag (!%p2534_p9), [#allocation4], %s242_s11 }
  0x41   : > { %s2630_s12 = scalar_lea.vmem (!%p2534_p9), [#allocation3], %s1680_s1 }
  0x44   : > { %2332 = dma.done.wait (%p2568_p1), %s243_s3, 4096  }
  0x45   : > { %2334 = vsyncadd (%p2568_p1), %s243_s3, 4294963200  ;;  %s252_s14 = sand.u32 1, %s2539_s10   ;;  %s254_s20 = sand.u32 1, %s2361_s16  }
  0x46   : > { %s1681_s24 = sshll.u32 %s254_s20, 8  ;;  %s253_s30 = scalar_lea.sflag [#allocation7], %s252_s14 }
  0x47   : > { %s2640_s4 = scalar_lea.vmem [#allocation6], %s1681_s24 }
  0x48   : > { %2336 = dma.done.wait (%p2577_p7), %s253_s30, 4128  }
  0x49   : > { %2338 = vsyncadd (%p2577_p7), %s253_s30, 4294963168  ;;  %v1870_v0 = vld [vmem:[%s2640_s4 + $0x70] sm:$0xf]  ;;  %v1997_v1 = vld [vmem:[%s2640_s4 + $0x74] sm:$0xf0]  ;;  %s1682_s6 = sshll.u32 %s254_s20, 1 }
  0x4a   : > { %v1934_v2 = vld [vmem:[%s2640_s4 + $0xf0] sm:$0xf]  ;;  %v1871_v3 = vor.u32 %v1997_v1, %v1870_v0  ;;  %v2013_v4 = vld [vmem:[%s2640_s4 + $0xf4] sm:$0xf0]  ;;  %v1996_v5 = vld [vmem:[%s2640_s4 + $0x74] sm:$0xf] }
  0x4b   : > { %v1872_v6 = vld [vmem:[%s2640_s4 + $0x78] sm:$0xf0]  ;;  %v1935_v7 = vor.u32 %v2013_v4, %v1934_v2  ;;  %v2012_v9 = vld [vmem:[%s2640_s4 + $0xf4] sm:$0xf]  ;;  %v1862_v11 = vld [vmem:[%s2640_s4 + $0x60] sm:$0xf] }
  0x4c   : > { %v1875_v8 = vor.u32 %v1996_v5, %v1872_v6  ;;  %v1936_v10 = vld [vmem:[%s2640_s4 + $0xf8] sm:$0xf0]  ;;  %823 = vmatpush.bf16.msra.mxu0 %v1871_v3  ;;  %v1995_v13 = vld [vmem:[%s2640_s4 + $0x64] sm:$0xf0]  ;;  %v1926_v14 = vld [vmem:[%s2640_s4 + $0xe0] sm:$0xf] }
  0x4d   : > { %v1939_v12 = vor.u32 %v2012_v9, %v1936_v10  ;;  %v2011_v15 = vld [vmem:[%s2640_s4 + $0xe4] sm:$0xf0]  ;;  %912 = vmatpush.bf16.msra.mxu1 %v1935_v7  ;;  %v1863_v16 = vor.u32 %v1995_v13, %v1862_v11  ;;  %v1994_v18 = vld [vmem:[%s2640_s4 + $0x64] sm:$0xf]  ;;  %v1864_v19 = vld [vmem:[%s2640_s4 + $0x68] sm:$0xf0] }
  0x4e   : > { %1001 = vmatpush.bf16.msra.mxu2 %v1875_v8  ;;  %v1927_v17 = vor.u32 %v2011_v15, %v1926_v14  ;;  %v2010_v20 = vld [vmem:[%s2640_s4 + $0xe4] sm:$0xf]  ;;  %v1867_v21 = vor.u32 %v1994_v18, %v1864_v19  ;;  %v1928_v22 = vld [vmem:[%s2640_s4 + $0xe8] sm:$0xf0]  ;;  %v1854_v23 = vld [vmem:[%s2640_s4 + $0x50] sm:$0xf] }
  0x4f   : > { %1090 = vmatpush.bf16.msra.mxu3 %v1939_v12  ;;  %v1993_v24 = vld [vmem:[%s2640_s4 + $0x54] sm:$0xf0]  ;;  %v1931_v25 = vor.u32 %v2010_v20, %v1928_v22  ;;  %v1918_v26 = vld [vmem:[%s2640_s4 + $0xd0] sm:$0xf]  ;;  %v1992_v28 = vld [vmem:[%s2640_s4 + $0x54] sm:$0xf] }
  0x50   : > { %v2009_v27 = vld [vmem:[%s2640_s4 + $0xd4] sm:$0xf0]  ;;  %824 = vmatpush.bf16.msra.mxu0 %v1863_v16  ;;  %v1855_v29 = vor.u32 %v1993_v24, %v1854_v23  ;;  %v1856_v30 = vld [vmem:[%s2640_s4 + $0x58] sm:$0xf0]  ;;  %v2008_v31 = vld [vmem:[%s2640_s4 + $0xd4] sm:$0xf] }
  0x51   : > { %v1920_v32 = vld [vmem:[%s2640_s4 + $0xd8] sm:$0xf0]  ;;  %913 = vmatpush.bf16.msra.mxu1 %v1927_v17  ;;  %v1919_v33 = vor.u32 %v2009_v27, %v1918_v26  ;;  %v1859_v34 = vor.u32 %v1992_v28, %v1856_v30  ;;  %v1846_v35 = vld [vmem:[%s2640_s4 + $0x40] sm:$0xf]  ;;  %v1991_v36 = vld [vmem:[%s2640_s4 + $0x44] sm:$0xf0] }
  0x52   : > { %1002 = vmatpush.bf16.msra.mxu2 %v1867_v21  ;;  %v1910_v37 = vld [vmem:[%s2640_s4 + $0xc0] sm:$0xf]  ;;  %v1923_v38 = vor.u32 %v2008_v31, %v1920_v32  ;;  %v2007_v39 = vld [vmem:[%s2640_s4 + $0xc4] sm:$0xf0]  ;;  %v1990_v40 = vld [vmem:[%s2640_s4 + $0x44] sm:$0xf]  ;;  %v1847_v44 = vor.u32 %v1991_v36, %v1846_v35 }
  0x53   : > { %1091 = vmatpush.bf16.msra.mxu3 %v1931_v25  ;;  %v1848_v41 = vld [vmem:[%s2640_s4 + $0x48] sm:$0xf0]  ;;  %v2006_v42 = vld [vmem:[%s2640_s4 + $0xc4] sm:$0xf]  ;;  %v1911_v45 = vor.u32 %v2007_v39, %v1910_v37  ;;  %v1838_v47 = vld [vmem:[%s2640_s4 + $0x30] sm:$0xf] }
  0x54   : > { %v1912_v43 = vld [vmem:[%s2640_s4 + $0xc8] sm:$0xf0]  ;;  %825 = vmatpush.bf16.msra.mxu0 %v1855_v29  ;;  %v1851_v46 = vor.u32 %v1990_v40, %v1848_v41  ;;  %v1989_v48 = vld [vmem:[%s2640_s4 + $0x34] sm:$0xf0]  ;;  %v1902_v49 = vld [vmem:[%s2640_s4 + $0xb0] sm:$0xf] }
  0x55   : > { %914 = vmatpush.bf16.msra.mxu1 %v1919_v33  ;;  %v1915_v50 = vor.u32 %v2006_v42, %v1912_v43  ;;  %v2005_v51 = vld [vmem:[%s2640_s4 + $0xb4] sm:$0xf0]  ;;  %v1988_v52 = vld [vmem:[%s2640_s4 + $0x34] sm:$0xf]  ;;  %v1840_v53 = vld [vmem:[%s2640_s4 + $0x38] sm:$0xf0]  ;;  %v1839_v56 = vor.u32 %v1989_v48, %v1838_v47 }
  0x56   : > { %1003 = vmatpush.bf16.msra.mxu2 %v1859_v34  ;;  %v2004_v54 = vld [vmem:[%s2640_s4 + $0xb4] sm:$0xf]  ;;  %v1904_v55 = vld [vmem:[%s2640_s4 + $0xb8] sm:$0xf0]  ;;  %v1903_v57 = vor.u32 %v2005_v51, %v1902_v49  ;;  %v1843_v58 = vor.u32 %v1988_v52, %v1840_v53  ;;  %v1830_v59 = vld [vmem:[%s2640_s4 + $0x20] sm:$0xf] }
  0x57   : > { %1092 = vmatpush.bf16.msra.mxu3 %v1923_v38  ;;  %v1987_v60 = vld [vmem:[%s2640_s4 + $0x24] sm:$0xf0]  ;;  %v1894_v61 = vld [vmem:[%s2640_s4 + $0xa0] sm:$0xf]  ;;  %v1907_v62 = vor.u32 %v2004_v54, %v1904_v55  ;;  %v1986_v0 = vld [vmem:[%s2640_s4 + $0x24] sm:$0xf] }
  0x58   : > { %826 = vmatpush.bf16.msra.mxu0 %v1847_v44  ;;  %v2003_v63 = vld [vmem:[%s2640_s4 + $0xa4] sm:$0xf0]  ;;  %v1832_v1 = vld [vmem:[%s2640_s4 + $0x28] sm:$0xf0]  ;;  %v2002_v2 = vld [vmem:[%s2640_s4 + $0xa4] sm:$0xf]  ;;  %v1831_v4 = vor.u32 %v1987_v60, %v1830_v59 }
  0x59   : > { %915 = vmatpush.bf16.msra.mxu1 %v1911_v45  ;;  %v1896_v3 = vld [vmem:[%s2640_s4 + $0xa8] sm:$0xf0]  ;;  %v1895_v5 = vor.u32 %v2003_v63, %v1894_v61  ;;  %v1835_v6 = vor.u32 %v1986_v0, %v1832_v1  ;;  %v1822_v7 = vld [vmem:[%s2640_s4 + $0x10] sm:$0xf]  ;;  %v1985_v8 = vld [vmem:[%s2640_s4 + $0x14] sm:$0xf0] }
  0x5a   : > { %1004 = vmatpush.bf16.msra.mxu2 %v1851_v46  ;;  %v1886_v9 = vld [vmem:[%s2640_s4 + $0x90] sm:$0xf]  ;;  %v1899_v10 = vor.u32 %v2002_v2, %v1896_v3  ;;  %v2001_v11 = vld [vmem:[%s2640_s4 + $0x94] sm:$0xf0]  ;;  %v1984_v12 = vld [vmem:[%s2640_s4 + $0x14] sm:$0xf]  ;;  %v1823_v16 = vor.u32 %v1985_v8, %v1822_v7 }
  0x5b   : > { %1093 = vmatpush.bf16.msra.mxu3 %v1915_v50  ;;  %v1824_v13 = vld [vmem:[%s2640_s4 + $0x18] sm:$0xf0]  ;;  %v2000_v14 = vld [vmem:[%s2640_s4 + $0x94] sm:$0xf]  ;;  %v1887_v17 = vor.u32 %v2001_v11, %v1886_v9  ;;  %v1814_v19 = vld [vmem:[%s2640_s4] sm:$0xf] }
  0x5c   : > { %827 = vmatpush.bf16.msra.mxu0 %v1839_v56  ;;  %v1888_v15 = vld [vmem:[%s2640_s4 + $0x98] sm:$0xf0]  ;;  %v1827_v18 = vor.u32 %v1984_v12, %v1824_v13  ;;  %v1983_v20 = vld [vmem:[%s2640_s4 + $0x4] sm:$0xf0]  ;;  %v1878_v21 = vld [vmem:[%s2640_s4 + $0x80] sm:$0xf] }
  0x5d   : > { %916 = vmatpush.bf16.msra.mxu1 %v1903_v57  ;;  %v1891_v22 = vor.u32 %v2000_v14, %v1888_v15  ;;  %v1999_v23 = vld [vmem:[%s2640_s4 + $0x84] sm:$0xf0]  ;;  %v1982_v24 = vld [vmem:[%s2640_s4 + $0x4] sm:$0xf]  ;;  %v1816_v25 = vld [vmem:[%s2640_s4 + $0x8] sm:$0xf0]  ;;  %v1815_v28 = vor.u32 %v1983_v20, %v1814_v19 }
  0x5e   : > { %1005 = vmatpush.bf16.msra.mxu2 %v1843_v58  ;;  %v1998_v26 = vld [vmem:[%s2640_s4 + $0x84] sm:$0xf]  ;;  %v1880_v27 = vld [vmem:[%s2640_s4 + $0x88] sm:$0xf0]  ;;  %v1686_v29 = vld [vmem:[%s2630_s12] sm:$0xf]  ;;  %v1879_v31 = vor.u32 %v1999_v23, %v1878_v21  ;;  %v1819_v32 = vor.u32 %v1982_v24, %v1816_v25 }
  0x5f   : > { %1094 = vmatpush.bf16.msra.mxu3 %v1907_v62  ;;  %v1951_v30 = vld [vmem:[%s2630_s12 + $0x4] sm:$0xf0]  ;;  %v1950_v33 = vld [vmem:[%s2630_s12 + $0x4] sm:$0xf]  ;;  %v1688_v34 = vld [vmem:[%s2630_s12 + $0x8] sm:$0xf0]  ;;  %v1883_v35 = vor.u32 %v1998_v26, %v1880_v27 }
  0x60   : > { %828 = vmatpush.bf16.msra.mxu0 %v1831_v4  ;;  %v1687_v36 = vor.u32 %v1951_v30, %v1686_v29  ;;  %v1691_v37 = vor.u32 %v1950_v33, %v1688_v34  ;;  %v1694_v38 = vld [vmem:[%s2630_s12 + $0x10] sm:$0xf]  ;;  %v1953_v39 = vld [vmem:[%s2630_s12 + $0x14] sm:$0xf0]  ;;  %v1952_v40 = vld [vmem:[%s2630_s12 + $0x14] sm:$0xf] }
  0x61   : > { %917 = vmatpush.bf16.msra.mxu1 %v1895_v5  ;;  %v1696_v41 = vld [vmem:[%s2630_s12 + $0x18] sm:$0xf0]  ;;  %v1695_v42 = vor.u32 %v1953_v39, %v1694_v38  ;;  %v1702_v44 = vld [vmem:[%s2630_s12 + $0x20] sm:$0xf]  ;;  %v1955_v45 = vld [vmem:[%s2630_s12 + $0x24] sm:$0xf0] }
  0x62   : > { %1006 = vmatpush.bf16.msra.mxu2 %v1835_v6  ;;  %v1699_v43 = vor.u32 %v1952_v40, %v1696_v41  ;;  %v1954_v46 = vld [vmem:[%s2630_s12 + $0x24] sm:$0xf]  ;;  %v1704_v47 = vld [vmem:[%s2630_s12 + $0x28] sm:$0xf0]  ;;  %v1703_v48 = vor.u32 %v1955_v45, %v1702_v44  ;;  %v1710_v50 = vld [vmem:[%s2630_s12 + $0x30] sm:$0xf] }
  0x63   : > { %1095 = vmatpush.bf16.msra.mxu3 %v1899_v10  ;;  %v1707_v49 = vor.u32 %v1954_v46, %v1704_v47  ;;  %v1957_v51 = vld [vmem:[%s2630_s12 + $0x34] sm:$0xf0]  ;;  %v1956_v52 = vld [vmem:[%s2630_s12 + $0x34] sm:$0xf]  ;;  %v1712_v53 = vld [vmem:[%s2630_s12 + $0x38] sm:$0xf0] }
  0x64   : > { %829 = vmatpush.bf16.msra.mxu0 %v1823_v16  ;;  %v1711_v54 = vor.u32 %v1957_v51, %v1710_v50  ;;  %v1715_v55 = vor.u32 %v1956_v52, %v1712_v53  ;;  %v1718_v56 = vld [vmem:[%s2630_s12 + $0x40] sm:$0xf]  ;;  %v1959_v57 = vld [vmem:[%s2630_s12 + $0x44] sm:$0xf0]  ;;  %v1958_v58 = vld [vmem:[%s2630_s12 + $0x44] sm:$0xf] }
  0x65   : > { %918 = vmatpush.bf16.msra.mxu1 %v1887_v17  ;;  %v1720_v59 = vld [vmem:[%s2630_s12 + $0x48] sm:$0xf0]  ;;  %v1719_v60 = vor.u32 %v1959_v57, %v1718_v56  ;;  %v1726_v62 = vld [vmem:[%s2630_s12 + $0x50] sm:$0xf]  ;;  %v1961_v63 = vld [vmem:[%s2630_s12 + $0x54] sm:$0xf0] }
  0x66   : > { %1007 = vmatpush.bf16.msra.mxu2 %v1827_v18  ;;  %v1723_v61 = vor.u32 %v1958_v58, %v1720_v59  ;;  %v1960_v0 = vld [vmem:[%s2630_s12 + $0x54] sm:$0xf]  ;;  %v1728_v1 = vld [vmem:[%s2630_s12 + $0x58] sm:$0xf0]  ;;  %v1727_v2 = vor.u32 %v1961_v63, %v1726_v62  ;;  %v1734_v4 = vld [vmem:[%s2630_s12 + $0x60] sm:$0xf] }
  0x67   : > { %1096 = vmatpush.bf16.msra.mxu3 %v1891_v22  ;;  %v1731_v3 = vor.u32 %v1960_v0, %v1728_v1  ;;  %v1963_v5 = vld [vmem:[%s2630_s12 + $0x64] sm:$0xf0]  ;;  %v1962_v6 = vld [vmem:[%s2630_s12 + $0x64] sm:$0xf]  ;;  %v1736_v7 = vld [vmem:[%s2630_s12 + $0x68] sm:$0xf0] }
  0x68   : > { %830 = vmatpush.bf16.msra.mxu0 %v1815_v28  ;;  %v1735_v8 = vor.u32 %v1963_v5, %v1734_v4  ;;  %v1739_v9 = vor.u32 %v1962_v6, %v1736_v7  ;;  %v1742_v10 = vld [vmem:[%s2630_s12 + $0x70] sm:$0xf]  ;;  %v1965_v11 = vld [vmem:[%s2630_s12 + $0x74] sm:$0xf0]  ;;  %v1964_v12 = vld [vmem:[%s2630_s12 + $0x74] sm:$0xf] }
  0x69   : > { %919 = vmatpush.bf16.msra.mxu1 %v1879_v31  ;;  %v1744_v13 = vld [vmem:[%s2630_s12 + $0x78] sm:$0xf0]  ;;  %v1743_v14 = vor.u32 %v1965_v11, %v1742_v10  ;;  %v1750_v16 = vld [vmem:[%s2630_s12 + $0x80] sm:$0xf]  ;;  %v1967_v17 = vld [vmem:[%s2630_s12 + $0x84] sm:$0xf0] }
  0x6a   : > { %1008 = vmatpush.bf16.msra.mxu2 %v1819_v32  ;;  %v1747_v15 = vor.u32 %v1964_v12, %v1744_v13  ;;  %v1966_v18 = vld [vmem:[%s2630_s12 + $0x84] sm:$0xf]  ;;  %v1752_v19 = vld [vmem:[%s2630_s12 + $0x88] sm:$0xf0]  ;;  %v1751_v20 = vor.u32 %v1967_v17, %v1750_v16  ;;  %s266_s8 = scalar_lea.vmem [#allocation8], %s1682_s6  ;;  %s297_s10 = sand.u32 1, %s2349_s13  }
  0x6b   : > { %1097 = vmatpush.bf16.msra.mxu3 %v1883_v35  ;;  %831 = vmatmul.bf16.vlgmr.msra.gmra.mxu0 %v1687_v36  ;;  %v1755_v22 = vor.u32 %v1966_v18, %v1752_v19  ;;  %v1374_v24 = vld [vmem:[%s266_s8] sm:$0x3]  ;;  %s1683_s27 = sshll.u32 %s297_s10, 8  ;;  %v1758_v35 = vld [vmem:[%s2630_s12 + $0x90] sm:$0xf]  ;;  %s2993_s9 = sld [smem:[#allocation17_spill]] }
  0x6c   : > { %920 = vmatmul.bf16.vlgmr.msra.gmra.mxu1 %v1691_v37  ;;  %v2748_v26 = vperm.slane %v1374_v24, 0  ;;  %v2751_v28 = vperm.slane %v1374_v24, 1  ;;  %v1968_v38 = vld [vmem:[%s2630_s12 + $0x94] sm:$0xf]  ;;  %v1760_v39 = vld [vmem:[%s2630_s12 + $0x98] sm:$0xf0] }
  0x6d   : > { %1009 = vmatmul.bf16.vlgmr.msra.gmra.mxu2 %v1687_v36  ;;  %v1969_v36 = vld [vmem:[%s2630_s12 + $0x94] sm:$0xf0]  ;;  %s2761_s15 = scalar_lea.vmem [#allocation9], %s1683_s27  ;;  %v1763_v45 = vor.u32 %v1968_v38, %v1760_v39  ;;  %v1766_v59 = vld [vmem:[%s2630_s12 + $0xa0] sm:$0xf]  ;;  %s2994_s29 = sld [smem:[#allocation16_spill]] }
  0x6e   : > { %1098 = vmatmul.bf16.vlgmr.msra.gmra.mxu3 %v1691_v37  ;;  %v1970_v62 = vld [vmem:[%s2630_s12 + $0xa4] sm:$0xf]  ;;  %v1768_v63 = vld [vmem:[%s2630_s12 + $0xa8] sm:$0xf0]  ;;  %v1774_v19 = vld [vmem:[%s2630_s12 + $0xb0] sm:$0xf] }
  0x6f   : > { %v1771_v5 = vor.u32 %v1970_v62, %v1768_v63  ;;  %s2995_s11 = sld [smem:[#allocation26_spill]]  ;;  %s1524_s3 = sshll.u32 %s2761_s15, 4  ;;  %s1525_s3 = int_to_ptr.vmem [resolvable:$true] %s1524_s3 }
  0x70   : > { %s1509_s14 = scalar_lea.sflag [#allocation5], %s297_s10 }
  0x71   : > { %s2014_s5 = smul.u32 192, %s2993_s9 }
  0x73   : > { %s1942_s18 = sshll.u32 %s2994_s29, 1 }
  0x74   : > { %s1521_s22 = sadd.s32 %s2014_s5, %s1942_s18 }
  0x75   : > { %s1944_s26 = sshll.u32 %s1521_s22, 2  ;;  %s2267_s6 = scalar_lea.hbm %s2995_s11, 1536 }
  0x76   : > { %s1523_s1 = scalar_lea.hbm %s2995_s11, %s1944_s26 }
  0x7b   : > { %836 = vmatmul.bf16.gmra.mxu0 %v1695_v42 }
  0x7c   : > { %925 = vmatmul.bf16.gmra.mxu1 %v1699_v43 }
  0x7d   : > { %1014 = vmatmul.bf16.gmra.mxu2 %v1695_v42  ;;  %v1759_v42 = vor.u32 %v1969_v36, %v1758_v35 }
  0x7e   : > { %1103 = vmatmul.bf16.gmra.mxu3 %v1699_v43 }
  0x8b   : > { %841 = vmatmul.bf16.gmra.mxu0 %v1703_v48 }
  0x8c   : > { %930 = vmatmul.bf16.gmra.mxu1 %v1707_v49 }
  0x8d   : > { %1019 = vmatmul.bf16.gmra.mxu2 %v1703_v48 }
  0x8e   : > { %1108 = vmatmul.bf16.gmra.mxu3 %v1707_v49 }
  0x9b   : > { %846 = vmatmul.bf16.gmra.mxu0 %v1711_v54 }
  0x9c   : > { %935 = vmatmul.bf16.gmra.mxu1 %v1715_v55 }
  0x9d   : > { %1024 = vmatmul.bf16.gmra.mxu2 %v1711_v54 }
  0x9e   : > { %1113 = vmatmul.bf16.gmra.mxu3 %v1715_v55 }
  0xab   : > { %851 = vmatmul.bf16.gmra.mxu0 %v1719_v60 }
  0xac   : > { %940 = vmatmul.bf16.gmra.mxu1 %v1723_v61 }
  0xad   : > { %1029 = vmatmul.bf16.gmra.mxu2 %v1719_v60  ;;  %v1971_v60 = vld [vmem:[%s2630_s12 + $0xa4] sm:$0xf0] }
  0xae   : > { %1118 = vmatmul.bf16.gmra.mxu3 %v1723_v61 }
  0xbb   : > { %856 = vmatmul.bf16.gmra.mxu0 %v1727_v2 }
  0xbc   : > { %945 = vmatmul.bf16.gmra.mxu1 %v1731_v3 }
  0xbd   : > { %1034 = vmatmul.bf16.gmra.mxu2 %v1727_v2  ;;  %v1767_v2 = vor.u32 %v1971_v60, %v1766_v59 }
  0xbe   : > { %1123 = vmatmul.bf16.gmra.mxu3 %v1731_v3 }
  0xcb   : > { %861 = vmatmul.bf16.gmra.mxu0 %v1735_v8 }
  0xcc   : > { %950 = vmatmul.bf16.gmra.mxu1 %v1739_v9 }
  0xcd   : > { %1039 = vmatmul.bf16.gmra.mxu2 %v1735_v8 }
  0xce   : > { %1128 = vmatmul.bf16.gmra.mxu3 %v1739_v9 }
  0xdb   : > { %866 = vmatmul.bf16.gmra.mxu0 %v1743_v14 }
  0xdc   : > { %955 = vmatmul.bf16.gmra.mxu1 %v1747_v15 }
  0xdd   : > { %1044 = vmatmul.bf16.gmra.mxu2 %v1743_v14 }
  0xde   : > { %1133 = vmatmul.bf16.gmra.mxu3 %v1747_v15 }
  0xe8   : > { %v832_v21 = vpop.f32.mrf.mxu0 }
  0xe9   : > { %v921_v23 = vpop.f32.mrf.mxu1 }
  0xea   : > { %v922_v25 = vadd.f32 %v921_v23, %v832_v21  ;;  %v1776_v23 = vld [vmem:[%s2630_s12 + $0xb8] sm:$0xf0] }
  0xeb   : > { %871 = vmatmul.bf16.gmra.mxu0 %v1751_v20 }
  0xec   : > { %960 = vmatmul.bf16.gmra.mxu1 %v1755_v22  ;;  %v1380_v31 = vadd.f32 %v2748_v26, %v922_v25 }
  0xed   : > { %1049 = vmatmul.bf16.gmra.mxu2 %v1751_v20  ;;  %v1973_v20 = vld [vmem:[%s2630_s12 + $0xb4] sm:$0xf0] }
  0xee   : > { %1138 = vmatmul.bf16.gmra.mxu3 %v1755_v22  ;;  %v1972_v22 = vld [vmem:[%s2630_s12 + $0xb4] sm:$0xf] }
  0xf0   : > { %v1010_v27 = vpop.f32.mrf.mxu2  ;;  %v834_v30 = vpop.f32.mrf.mxu0 }
  0xf1   : > { %v1099_v29 = vpop.f32.mrf.mxu3  ;;  %v923_v33 = vpop.f32.mrf.mxu1 }
  0xf2   : > { %v1100_v32 = vadd.f32 %v1099_v29, %v1010_v27  ;;  %v924_v40 = vadd.f32 %v923_v33, %v834_v30  ;;  %v1775_v27 = vor.u32 %v1973_v20, %v1774_v19 }
  0xf4   : > { %v1381_v34 = vadd.f32 %v2751_v28, %v1100_v32  ;;  %v1382_v48 = vadd.f32 %v2748_v26, %v924_v40 }
  0xf6   : > { %v1444_v37 = vpack.c.bf16 %v1381_v34, %v1380_v31  ;;  %v1779_v31 = vor.u32 %v1972_v22, %v1776_v23 }
  0xf8   : > { %1476 = vst [vmem:[%s2761_s15] sm:$0xff] %v1444_v37  ;;  %v1012_v41 = vpop.f32.mrf.mxu2  ;;  %v837_v44 = vpop.f32.mrf.mxu0 }
  0xf9   : > { %v1101_v43 = vpop.f32.mrf.mxu3  ;;  %v926_v47 = vpop.f32.mrf.mxu1 }
  0xfa   : > { %v1102_v46 = vadd.f32 %v1101_v43, %v1012_v41  ;;  %v927_v51 = vadd.f32 %v926_v47, %v837_v44 }
  0xfb   : > { %876 = vmatmul.bf16.gmra.mxu0 %v1759_v42 }
  0xfc   : > { %v1383_v49 = vadd.f32 %v2751_v28, %v1102_v46  ;;  %965 = vmatmul.bf16.gmra.mxu1 %v1763_v45  ;;  %v1384_v55 = vadd.f32 %v2748_v26, %v927_v51  ;;  %v1975_v46 = vld [vmem:[%s2630_s12 + $0xc4] sm:$0xf0] }
  0xfd   : > { %1054 = vmatmul.bf16.gmra.mxu2 %v1759_v42 }
  0xfe   : > { %v1445_v50 = vpack.c.bf16 %v1383_v49, %v1382_v48  ;;  %1143 = vmatmul.bf16.gmra.mxu3 %v1763_v45  ;;  %v1782_v45 = vld [vmem:[%s2630_s12 + $0xc0] sm:$0xf]  ;;  %v1974_v48 = vld [vmem:[%s2630_s12 + $0xc4] sm:$0xf]  ;;  %v1784_v49 = vld [vmem:[%s2630_s12 + $0xc8] sm:$0xf0] }
 0x100   : > { %1477 = vst [vmem:[%s2761_s15 + $0x8] sm:$0xff] %v1445_v50  ;;  %v1015_v52 = vpop.f32.mrf.mxu2  ;;  %v839_v54 = vpop.f32.mrf.mxu0 }
 0x101   : > { %v1104_v53 = vpop.f32.mrf.mxu3  ;;  %v928_v57 = vpop.f32.mrf.mxu1 }
 0x102   : > { %v1105_v56 = vadd.f32 %v1104_v53, %v1015_v52  ;;  %v929_v0 = vadd.f32 %v928_v57, %v839_v54  ;;  %v1783_v52 = vor.u32 %v1975_v46, %v1782_v45 }
 0x104   : > { %v1385_v58 = vadd.f32 %v2751_v28, %v1105_v56  ;;  %v1386_v8 = vadd.f32 %v2748_v26, %v929_v0 }
 0x106   : > { %v1446_v61 = vpack.c.bf16 %v1385_v58, %v1384_v55  ;;  %v1787_v55 = vor.u32 %v1974_v48, %v1784_v49 }
 0x108   : > { %1478 = vst [vmem:[%s2761_s15 + $0x10] sm:$0xff] %v1446_v61  ;;  %v1017_v1 = vpop.f32.mrf.mxu2  ;;  %v842_v4 = vpop.f32.mrf.mxu0 }
 0x109   : > { %v1106_v3 = vpop.f32.mrf.mxu3  ;;  %v931_v7 = vpop.f32.mrf.mxu1 }
 0x10a   : > { %v1107_v6 = vadd.f32 %v1106_v3, %v1017_v1  ;;  %v932_v11 = vadd.f32 %v931_v7, %v842_v4 }
 0x10b   : > { %881 = vmatmul.bf16.gmra.mxu0 %v1767_v2 }
 0x10c   : > { %v1387_v9 = vadd.f32 %v2751_v28, %v1107_v6  ;;  %970 = vmatmul.bf16.gmra.mxu1 %v1771_v5  ;;  %v1388_v15 = vadd.f32 %v2748_v26, %v932_v11  ;;  %v1977_v6 = vld [vmem:[%s2630_s12 + $0xd4] sm:$0xf0] }
 0x10d   : > { %1059 = vmatmul.bf16.gmra.mxu2 %v1767_v2 }
 0x10e   : > { %v1447_v10 = vpack.c.bf16 %v1387_v9, %v1386_v8  ;;  %1148 = vmatmul.bf16.gmra.mxu3 %v1771_v5  ;;  %v1790_v5 = vld [vmem:[%s2630_s12 + $0xd0] sm:$0xf]  ;;  %v1976_v8 = vld [vmem:[%s2630_s12 + $0xd4] sm:$0xf]  ;;  %v1792_v9 = vld [vmem:[%s2630_s12 + $0xd8] sm:$0xf0] }
 0x110   : > { %1479 = vst [vmem:[%s2761_s15 + $0x18] sm:$0xff] %v1447_v10  ;;  %v1020_v12 = vpop.f32.mrf.mxu2  ;;  %v844_v14 = vpop.f32.mrf.mxu0 }
 0x111   : > { %v1109_v13 = vpop.f32.mrf.mxu3  ;;  %v933_v17 = vpop.f32.mrf.mxu1 }
 0x112   : > { %v1110_v16 = vadd.f32 %v1109_v13, %v1020_v12  ;;  %v934_v24 = vadd.f32 %v933_v17, %v844_v14  ;;  %v1791_v12 = vor.u32 %v1977_v6, %v1790_v5 }
 0x114   : > { %v1389_v18 = vadd.f32 %v2751_v28, %v1110_v16  ;;  %v1390_v34 = vadd.f32 %v2748_v26, %v934_v24 }
 0x116   : > { %v1448_v21 = vpack.c.bf16 %v1389_v18, %v1388_v15  ;;  %v1795_v15 = vor.u32 %v1976_v8, %v1792_v9 }
 0x118   : > { %1480 = vst [vmem:[%s2761_s15 + $0x20] sm:$0xff] %v1448_v21  ;;  %v1022_v25 = vpop.f32.mrf.mxu2  ;;  %v847_v30 = vpop.f32.mrf.mxu0 }
 0x119   : > { %v1111_v29 = vpop.f32.mrf.mxu3  ;;  %v936_v33 = vpop.f32.mrf.mxu1 }
 0x11a   : > { %v1112_v32 = vadd.f32 %v1111_v29, %v1022_v25  ;;  %v937_v37 = vadd.f32 %v936_v33, %v847_v30 }
 0x11b   : > { %886 = vmatmul.bf16.gmra.mxu0 %v1775_v27 }
 0x11c   : > { %v1391_v35 = vadd.f32 %v2751_v28, %v1112_v32  ;;  %975 = vmatmul.bf16.gmra.mxu1 %v1779_v31  ;;  %v1392_v41 = vadd.f32 %v2748_v26, %v937_v37  ;;  %v1979_v32 = vld [vmem:[%s2630_s12 + $0xe4] sm:$0xf0] }
 0x11d   : > { %1064 = vmatmul.bf16.gmra.mxu2 %v1775_v27 }
 0x11e   : > { %v1449_v36 = vpack.c.bf16 %v1391_v35, %v1390_v34  ;;  %1153 = vmatmul.bf16.gmra.mxu3 %v1779_v31  ;;  %v1798_v31 = vld [vmem:[%s2630_s12 + $0xe0] sm:$0xf]  ;;  %v1978_v34 = vld [vmem:[%s2630_s12 + $0xe4] sm:$0xf]  ;;  %v1800_v35 = vld [vmem:[%s2630_s12 + $0xe8] sm:$0xf0] }
 0x120   : > { %1481 = vst [vmem:[%s2761_s15 + $0x28] sm:$0xff] %v1449_v36  ;;  %v1025_v38 = vpop.f32.mrf.mxu2  ;;  %v849_v40 = vpop.f32.mrf.mxu0 }
 0x121   : > { %v1114_v39 = vpop.f32.mrf.mxu3  ;;  %v938_v43 = vpop.f32.mrf.mxu1 }
 0x122   : > { %v1115_v42 = vadd.f32 %v1114_v39, %v1025_v38  ;;  %v939_v50 = vadd.f32 %v938_v43, %v849_v40  ;;  %v1799_v38 = vor.u32 %v1979_v32, %v1798_v31 }
 0x124   : > { %v1393_v44 = vadd.f32 %v2751_v28, %v1115_v42  ;;  %v1394_v58 = vadd.f32 %v2748_v26, %v939_v50 }
 0x126   : > { %v1450_v47 = vpack.c.bf16 %v1393_v44, %v1392_v41  ;;  %v1803_v41 = vor.u32 %v1978_v34, %v1800_v35 }
 0x128   : > { %1482 = vst [vmem:[%s2761_s15 + $0x30] sm:$0xff] %v1450_v47  ;;  %v1027_v51 = vpop.f32.mrf.mxu2  ;;  %v852_v54 = vpop.f32.mrf.mxu0 }
 0x129   : > { %v1116_v53 = vpop.f32.mrf.mxu3  ;;  %v941_v57 = vpop.f32.mrf.mxu1 }
 0x12a   : > { %v1117_v56 = vadd.f32 %v1116_v53, %v1027_v51  ;;  %v942_v61 = vadd.f32 %v941_v57, %v852_v54 }
 0x12b   : > { %891 = vmatmul.bf16.gmra.mxu0 %v1783_v52 }
 0x12c   : > { %v1395_v59 = vadd.f32 %v2751_v28, %v1117_v56  ;;  %980 = vmatmul.bf16.gmra.mxu1 %v1787_v55  ;;  %v1396_v1 = vadd.f32 %v2748_v26, %v942_v61  ;;  %v1981_v56 = vld [vmem:[%s2630_s12 + $0xf4] sm:$0xf0] }
 0x12d   : > { %1069 = vmatmul.bf16.gmra.mxu2 %v1783_v52 }
 0x12e   : > { %v1451_v60 = vpack.c.bf16 %v1395_v59, %v1394_v58  ;;  %1158 = vmatmul.bf16.gmra.mxu3 %v1787_v55  ;;  %v1806_v55 = vld [vmem:[%s2630_s12 + $0xf0] sm:$0xf]  ;;  %v1980_v58 = vld [vmem:[%s2630_s12 + $0xf4] sm:$0xf]  ;;  %v1808_v59 = vld [vmem:[%s2630_s12 + $0xf8] sm:$0xf0] }
 0x12f   : > { %s1526_s12 = sshll.u32 %s1523_s1, 4  ;;  %s1527_s12 = int_to_ptr.hbm [resolvable:$true] %s1526_s12 }
 0x130   : > { %1483 = vst [vmem:[%s2761_s15 + $0x38] sm:$0xff] %v1451_v60  ;;  %v1030_v62 = vpop.f32.mrf.mxu2  ;;  %v854_v0 = vpop.f32.mrf.mxu0  ;;  %s2261_s20 = sshra.s32 %s1527_s12, 4  ;;  %s2262_s20 = int_to_ptr.hbm [resolvable:$true] %s2261_s20 }
 0x131   : > { %v1119_v63 = vpop.f32.mrf.mxu3  ;;  %v943_v3 = vpop.f32.mrf.mxu1  ;;  %s2263_s24 = scalar_lea.hbm %s2262_s20, 256  ;;  %p2268_p2 = scmp.lt.s32.totalorder %s2262_s20, %s2995_s11 }
 0x132   : > { %v1120_v2 = vadd.f32 %v1119_v63, %v1030_v62  ;;  %v944_v10 = vadd.f32 %v943_v3, %v854_v0  ;;  %v1807_v62 = vor.u32 %v1981_v56, %v1806_v55  ;;  %p2264_p4 = scmp.ne.s32.totalorder %s2262_s20, %s2263_s24  ;;  %p2269_p1 = scmp.lt.s32.totalorder %s2267_s6, %s2263_s24 }
 0x134   : > { %v1397_v4 = vadd.f32 %v2751_v28, %v1120_v2  ;;  %v1398_v18 = vadd.f32 %v2748_v26, %v944_v10  ;;  %p2265_p6 = pnand %p2264_p4, %p2596_p3  ;;  %p2270_p7 = por %p2269_p1, %p2268_p2 }
 0x136   : > { %v1452_v7 = vpack.c.bf16 %v1397_v4, %v1396_v1  ;;  %v1811_v1 = vor.u32 %v1980_v58, %v1808_v59  ;;  %p2266_p9 = pneg %p2265_p6 }
 0x138   : > { %1484 = vst [vmem:[%s2761_s15 + $0x40] sm:$0xff] %v1452_v7  ;;  %v1032_v11 = vpop.f32.mrf.mxu2  ;;  %v857_v14 = vpop.f32.mrf.mxu0  ;;  %p2271_p8 = pnand %p2270_p7, %p2266_p9 }
 0x139   : > { %v1121_v13 = vpop.f32.mrf.mxu3  ;;  %v946_v17 = vpop.f32.mrf.mxu1 }
 0x13a   : > { %v1122_v16 = vadd.f32 %v1121_v13, %v1032_v11  ;;  %v947_v21 = vadd.f32 %v946_v17, %v857_v14 }
 0x13b   : > { %896 = vmatmul.bf16.gmra.mxu0 %v1791_v12 }
 0x13c   : > { %v1399_v19 = vadd.f32 %v2751_v28, %v1122_v16  ;;  %985 = vmatmul.bf16.gmra.mxu1 %v1795_v15  ;;  %v1400_v25 = vadd.f32 %v2748_v26, %v947_v21 }
 0x13d   : > { %1074 = vmatmul.bf16.gmra.mxu2 %v1791_v12 }
 0x13e   : > { %v1453_v20 = vpack.c.bf16 %v1399_v19, %v1398_v18  ;;  %1163 = vmatmul.bf16.gmra.mxu3 %v1795_v15 }
 0x140   : > { %1485 = vst [vmem:[%s2761_s15 + $0x48] sm:$0xff] %v1453_v20  ;;  %v1035_v22 = vpop.f32.mrf.mxu2  ;;  %v859_v24 = vpop.f32.mrf.mxu0 }
 0x141   : > { %v1124_v23 = vpop.f32.mrf.mxu3  ;;  %v948_v29 = vpop.f32.mrf.mxu1 }
 0x142   : > { %v1125_v27 = vadd.f32 %v1124_v23, %v1035_v22  ;;  %v949_v36 = vadd.f32 %v948_v29, %v859_v24 }
 0x144   : > { %v1401_v30 = vadd.f32 %v2751_v28, %v1125_v27  ;;  %v1402_v44 = vadd.f32 %v2748_v26, %v949_v36 }
 0x146   : > { %v1454_v33 = vpack.c.bf16 %v1401_v30, %v1400_v25 }
 0x148   : > { %1486 = vst [vmem:[%s2761_s15 + $0x50] sm:$0xff] %v1454_v33  ;;  %v1037_v37 = vpop.f32.mrf.mxu2  ;;  %v862_v40 = vpop.f32.mrf.mxu0 }
 0x149   : > { %v1126_v39 = vpop.f32.mrf.mxu3  ;;  %v951_v43 = vpop.f32.mrf.mxu1 }
 0x14a   : > { %v1127_v42 = vadd.f32 %v1126_v39, %v1037_v37  ;;  %v952_v47 = vadd.f32 %v951_v43, %v862_v40 }
 0x14b   : > { %901 = vmatmul.bf16.gmra.mxu0 %v1799_v38 }
 0x14c   : > { %v1403_v45 = vadd.f32 %v2751_v28, %v1127_v42  ;;  %990 = vmatmul.bf16.gmra.mxu1 %v1803_v41  ;;  %v1404_v51 = vadd.f32 %v2748_v26, %v952_v47 }
 0x14d   : > { %1079 = vmatmul.bf16.gmra.mxu2 %v1799_v38 }
 0x14e   : > { %v1455_v46 = vpack.c.bf16 %v1403_v45, %v1402_v44  ;;  %1168 = vmatmul.bf16.gmra.mxu3 %v1803_v41 }
 0x150   : > { %1487 = vst [vmem:[%s2761_s15 + $0x58] sm:$0xff] %v1455_v46  ;;  %v1040_v48 = vpop.f32.mrf.mxu2  ;;  %v864_v50 = vpop.f32.mrf.mxu0 }
 0x151   : > { %v1129_v49 = vpop.f32.mrf.mxu3  ;;  %v953_v53 = vpop.f32.mrf.mxu1 }
 0x152   : > { %v1130_v52 = vadd.f32 %v1129_v49, %v1040_v48  ;;  %v954_v60 = vadd.f32 %v953_v53, %v864_v50 }
 0x154   : > { %v1405_v54 = vadd.f32 %v2751_v28, %v1130_v52  ;;  %v1406_v4 = vadd.f32 %v2748_v26, %v954_v60 }
 0x156   : > { %v1456_v57 = vpack.c.bf16 %v1405_v54, %v1404_v51 }
 0x158   : > { %1488 = vst [vmem:[%s2761_s15 + $0x60] sm:$0xff] %v1456_v57  ;;  %v1042_v61 = vpop.f32.mrf.mxu2  ;;  %v867_v0 = vpop.f32.mrf.mxu0 }
 0x159   : > { %v1131_v63 = vpop.f32.mrf.mxu3  ;;  %v956_v3 = vpop.f32.mrf.mxu1 }
 0x15a   : > { %v1132_v2 = vadd.f32 %v1131_v63, %v1042_v61  ;;  %v957_v7 = vadd.f32 %v956_v3, %v867_v0 }
 0x15b   : > { %906 = vmatmul.bf16.gmra.mxu0 %v1807_v62 }
 0x15c   : > { %v1407_v5 = vadd.f32 %v2751_v28, %v1132_v2  ;;  %995 = vmatmul.bf16.gmra.mxu1 %v1811_v1  ;;  %v1408_v11 = vadd.f32 %v2748_v26, %v957_v7 }
 0x15d   : > { %1084 = vmatmul.bf16.gmra.mxu2 %v1807_v62 }
 0x15e   : > { %v1457_v6 = vpack.c.bf16 %v1407_v5, %v1406_v4  ;;  %1173 = vmatmul.bf16.gmra.mxu3 %v1811_v1 }
 0x160   : > { %1489 = vst [vmem:[%s2761_s15 + $0x68] sm:$0xff] %v1457_v6  ;;  %v1045_v8 = vpop.f32.mrf.mxu2  ;;  %v869_v10 = vpop.f32.mrf.mxu0 }
 0x161   : > { %v1134_v9 = vpop.f32.mrf.mxu3  ;;  %v958_v13 = vpop.f32.mrf.mxu1 }
 0x162   : > { %v1135_v12 = vadd.f32 %v1134_v9, %v1045_v8  ;;  %v959_v16 = vadd.f32 %v958_v13, %v869_v10 }
 0x164   : > { %v1409_v14 = vadd.f32 %v2751_v28, %v1135_v12  ;;  %v1410_v22 = vadd.f32 %v2748_v26, %v959_v16 }
 0x166   : > { %v1458_v15 = vpack.c.bf16 %v1409_v14, %v1408_v11 }
 0x168   : > { %1490 = vst [vmem:[%s2761_s15 + $0x70] sm:$0xff] %v1458_v15  ;;  %v1047_v17 = vpop.f32.mrf.mxu2  ;;  %v872_v19 = vpop.f32.mrf.mxu0 }
 0x169   : > { %v1136_v18 = vpop.f32.mrf.mxu3  ;;  %v961_v21 = vpop.f32.mrf.mxu1 }
 0x16a   : > { %v1137_v20 = vadd.f32 %v1136_v18, %v1047_v17  ;;  %v962_v25 = vadd.f32 %v961_v21, %v872_v19 }
 0x16c   : > { %v1411_v23 = vadd.f32 %v2751_v28, %v1137_v20  ;;  %v1412_v31 = vadd.f32 %v2748_v26, %v962_v25 }
 0x16e   : > { %v1459_v24 = vpack.c.bf16 %v1411_v23, %v1410_v22 }
 0x170   : > { %1491 = vst [vmem:[%s2761_s15 + $0x78] sm:$0xff] %v1459_v24  ;;  %v1050_v27 = vpop.f32.mrf.mxu2  ;;  %v874_v30 = vpop.f32.mrf.mxu0 }
 0x171   : > { %v1139_v29 = vpop.f32.mrf.mxu3  ;;  %v963_v33 = vpop.f32.mrf.mxu1 }
 0x172   : > { %v1140_v32 = vadd.f32 %v1139_v29, %v1050_v27  ;;  %v964_v36 = vadd.f32 %v963_v33, %v874_v30 }
 0x174   : > { %v1413_v34 = vadd.f32 %v2751_v28, %v1140_v32  ;;  %v1414_v42 = vadd.f32 %v2748_v26, %v964_v36 }
 0x176   : > { %v1460_v35 = vpack.c.bf16 %v1413_v34, %v1412_v31 }
 0x178   : > { %1492 = vst [vmem:[%s2761_s15 + $0x80] sm:$0xff] %v1460_v35  ;;  %v1052_v37 = vpop.f32.mrf.mxu2  ;;  %v877_v39 = vpop.f32.mrf.mxu0 }
 0x179   : > { %v1141_v38 = vpop.f32.mrf.mxu3  ;;  %v966_v41 = vpop.f32.mrf.mxu1 }
 0x17a   : > { %v1142_v40 = vadd.f32 %v1141_v38, %v1052_v37  ;;  %v967_v45 = vadd.f32 %v966_v41, %v877_v39 }
 0x17c   : > { %v1415_v43 = vadd.f32 %v2751_v28, %v1142_v40  ;;  %v1416_v49 = vadd.f32 %v2748_v26, %v967_v45 }
 0x17e   : > { %v1461_v44 = vpack.c.bf16 %v1415_v43, %v1414_v42 }
 0x180   : > { %1493 = vst [vmem:[%s2761_s15 + $0x88] sm:$0xff] %v1461_v44  ;;  %v1055_v46 = vpop.f32.mrf.mxu2  ;;  %v879_v48 = vpop.f32.mrf.mxu0 }
 0x181   : > { %v1144_v47 = vpop.f32.mrf.mxu3  ;;  %v968_v51 = vpop.f32.mrf.mxu1 }
 0x182   : > { %v1145_v50 = vadd.f32 %v1144_v47, %v1055_v46  ;;  %v969_v54 = vadd.f32 %v968_v51, %v879_v48 }
 0x184   : > { %v1417_v52 = vadd.f32 %v2751_v28, %v1145_v50  ;;  %v1418_v60 = vadd.f32 %v2748_v26, %v969_v54 }
 0x186   : > { %v1462_v53 = vpack.c.bf16 %v1417_v52, %v1416_v49 }
 0x188   : > { %1494 = vst [vmem:[%s2761_s15 + $0x90] sm:$0xff] %v1462_v53  ;;  %v1057_v55 = vpop.f32.mrf.mxu2  ;;  %v882_v57 = vpop.f32.mrf.mxu0 }
 0x189   : > { %v1146_v56 = vpop.f32.mrf.mxu3  ;;  %v971_v59 = vpop.f32.mrf.mxu1 }
 0x18a   : > { %v1147_v58 = vadd.f32 %v1146_v56, %v1057_v55  ;;  %v972_v63 = vadd.f32 %v971_v59, %v882_v57 }
 0x18c   : > { %v1419_v61 = vadd.f32 %v2751_v28, %v1147_v58  ;;  %v1420_v3 = vadd.f32 %v2748_v26, %v972_v63 }
 0x18e   : > { %v1463_v62 = vpack.c.bf16 %v1419_v61, %v1418_v60 }
 0x190   : > { %1495 = vst [vmem:[%s2761_s15 + $0x98] sm:$0xff] %v1463_v62  ;;  %v1060_v0 = vpop.f32.mrf.mxu2  ;;  %v884_v2 = vpop.f32.mrf.mxu0 }
 0x191   : > { %v1149_v1 = vpop.f32.mrf.mxu3  ;;  %v973_v5 = vpop.f32.mrf.mxu1 }
 0x192   : > { %v1150_v4 = vadd.f32 %v1149_v1, %v1060_v0  ;;  %v974_v8 = vadd.f32 %v973_v5, %v884_v2 }
 0x194   : > { %v1421_v6 = vadd.f32 %v2751_v28, %v1150_v4  ;;  %v1422_v14 = vadd.f32 %v2748_v26, %v974_v8 }
 0x196   : > { %v1464_v7 = vpack.c.bf16 %v1421_v6, %v1420_v3 }
 0x198   : > { %1496 = vst [vmem:[%s2761_s15 + $0xa0] sm:$0xff] %v1464_v7  ;;  %v1062_v9 = vpop.f32.mrf.mxu2  ;;  %v887_v11 = vpop.f32.mrf.mxu0 }
 0x199   : > { %v1151_v10 = vpop.f32.mrf.mxu3  ;;  %v976_v13 = vpop.f32.mrf.mxu1 }
 0x19a   : > { %v1152_v12 = vadd.f32 %v1151_v10, %v1062_v9  ;;  %v977_v17 = vadd.f32 %v976_v13, %v887_v11 }
 0x19c   : > { %v1423_v15 = vadd.f32 %v2751_v28, %v1152_v12  ;;  %v1424_v21 = vadd.f32 %v2748_v26, %v977_v17 }
 0x19e   : > { %v1465_v16 = vpack.c.bf16 %v1423_v15, %v1422_v14 }
 0x1a0   : > { %1497 = vst [vmem:[%s2761_s15 + $0xa8] sm:$0xff] %v1465_v16  ;;  %v1065_v18 = vpop.f32.mrf.mxu2  ;;  %v889_v20 = vpop.f32.mrf.mxu0 }
 0x1a1   : > { %v1154_v19 = vpop.f32.mrf.mxu3  ;;  %v978_v23 = vpop.f32.mrf.mxu1 }
 0x1a2   : > { %v1155_v22 = vadd.f32 %v1154_v19, %v1065_v18  ;;  %v979_v27 = vadd.f32 %v978_v23, %v889_v20 }
 0x1a4   : > { %v1425_v24 = vadd.f32 %v2751_v28, %v1155_v22  ;;  %v1426_v34 = vadd.f32 %v2748_v26, %v979_v27 }
 0x1a6   : > { %v1466_v25 = vpack.c.bf16 %v1425_v24, %v1424_v21 }
 0x1a8   : > { %1498 = vst [vmem:[%s2761_s15 + $0xb0] sm:$0xff] %v1466_v25  ;;  %v1067_v29 = vpop.f32.mrf.mxu2  ;;  %v892_v31 = vpop.f32.mrf.mxu0 }
 0x1a9   : > { %v1156_v30 = vpop.f32.mrf.mxu3  ;;  %v981_v33 = vpop.f32.mrf.mxu1 }
 0x1aa   : > { %v1157_v32 = vadd.f32 %v1156_v30, %v1067_v29  ;;  %v982_v37 = vadd.f32 %v981_v33, %v892_v31 }
 0x1ac   : > { %v1427_v35 = vadd.f32 %v2751_v28, %v1157_v32  ;;  %v1428_v41 = vadd.f32 %v2748_v26, %v982_v37 }
 0x1ae   : > { %v1467_v36 = vpack.c.bf16 %v1427_v35, %v1426_v34 }
 0x1b0   : > { %1499 = vst [vmem:[%s2761_s15 + $0xb8] sm:$0xff] %v1467_v36  ;;  %v1070_v38 = vpop.f32.mrf.mxu2  ;;  %v894_v40 = vpop.f32.mrf.mxu0 }
 0x1b1   : > { %v1159_v39 = vpop.f32.mrf.mxu3  ;;  %v983_v43 = vpop.f32.mrf.mxu1 }
 0x1b2   : > { %v1160_v42 = vadd.f32 %v1159_v39, %v1070_v38  ;;  %v984_v46 = vadd.f32 %v983_v43, %v894_v40 }
 0x1b4   : > { %v1429_v44 = vadd.f32 %v2751_v28, %v1160_v42  ;;  %v1430_v52 = vadd.f32 %v2748_v26, %v984_v46 }
 0x1b6   : > { %v1468_v45 = vpack.c.bf16 %v1429_v44, %v1428_v41 }
 0x1b8   : > { %1500 = vst [vmem:[%s2761_s15 + $0xc0] sm:$0xff] %v1468_v45  ;;  %v1072_v47 = vpop.f32.mrf.mxu2  ;;  %v897_v49 = vpop.f32.mrf.mxu0 }
 0x1b9   : > { %v1161_v48 = vpop.f32.mrf.mxu3  ;;  %v986_v51 = vpop.f32.mrf.mxu1 }
 0x1ba   : > { %v1162_v50 = vadd.f32 %v1161_v48, %v1072_v47  ;;  %v987_v55 = vadd.f32 %v986_v51, %v897_v49 }
 0x1bc   : > { %v1431_v53 = vadd.f32 %v2751_v28, %v1162_v50  ;;  %v1432_v59 = vadd.f32 %v2748_v26, %v987_v55 }
 0x1be   : > { %v1469_v54 = vpack.c.bf16 %v1431_v53, %v1430_v52 }
 0x1c0   : > { %1501 = vst [vmem:[%s2761_s15 + $0xc8] sm:$0xff] %v1469_v54  ;;  %v1075_v56 = vpop.f32.mrf.mxu2  ;;  %v899_v58 = vpop.f32.mrf.mxu0 }
 0x1c1   : > { %v1164_v57 = vpop.f32.mrf.mxu3  ;;  %v988_v61 = vpop.f32.mrf.mxu1 }
 0x1c2   : > { %v1165_v60 = vadd.f32 %v1164_v57, %v1075_v56  ;;  %v989_v0 = vadd.f32 %v988_v61, %v899_v58 }
 0x1c4   : > { %v1433_v62 = vadd.f32 %v2751_v28, %v1165_v60  ;;  %v1434_v6 = vadd.f32 %v2748_v26, %v989_v0 }
 0x1c6   : > { %v1470_v63 = vpack.c.bf16 %v1433_v62, %v1432_v59 }
 0x1c8   : > { %1502 = vst [vmem:[%s2761_s15 + $0xd0] sm:$0xff] %v1470_v63  ;;  %v1077_v1 = vpop.f32.mrf.mxu2  ;;  %v902_v3 = vpop.f32.mrf.mxu0 }
 0x1c9   : > { %v1166_v2 = vpop.f32.mrf.mxu3  ;;  %v991_v5 = vpop.f32.mrf.mxu1 }
 0x1ca   : > { %v1167_v4 = vadd.f32 %v1166_v2, %v1077_v1  ;;  %v992_v9 = vadd.f32 %v991_v5, %v902_v3 }
 0x1cc   : > { %v1435_v7 = vadd.f32 %v2751_v28, %v1167_v4  ;;  %v1436_v13 = vadd.f32 %v2748_v26, %v992_v9 }
 0x1ce   : > { %v1471_v8 = vpack.c.bf16 %v1435_v7, %v1434_v6 }
 0x1d0   : > { %1503 = vst [vmem:[%s2761_s15 + $0xd8] sm:$0xff] %v1471_v8  ;;  %v1080_v10 = vpop.f32.mrf.mxu2  ;;  %v904_v12 = vpop.f32.mrf.mxu0 }
 0x1d1   : > { %v1169_v11 = vpop.f32.mrf.mxu3  ;;  %v993_v15 = vpop.f32.mrf.mxu1 }
 0x1d2   : > { %v1170_v14 = vadd.f32 %v1169_v11, %v1080_v10  ;;  %v994_v18 = vadd.f32 %v993_v15, %v904_v12 }
 0x1d4   : > { %v1437_v16 = vadd.f32 %v2751_v28, %v1170_v14  ;;  %v1438_v24 = vadd.f32 %v2748_v26, %v994_v18 }
 0x1d6   : > { %v1472_v17 = vpack.c.bf16 %v1437_v16, %v1436_v13 }
 0x1d8   : > { %1504 = vst [vmem:[%s2761_s15 + $0xe0] sm:$0xff] %v1472_v17  ;;  %v1082_v19 = vpop.f32.mrf.mxu2  ;;  %v907_v22 = vpop.f32.mrf.mxu0 }
 0x1d9   : > { %v1171_v20 = vpop.f32.mrf.mxu3  ;;  %v996_v23 = vpop.f32.mrf.mxu1 }
 0x1da   : > { %v1172_v21 = vadd.f32 %v1171_v20, %v1082_v19  ;;  %v997_v29 = vadd.f32 %v996_v23, %v907_v22 }
 0x1dc   : > { %v1439_v25 = vadd.f32 %v2751_v28, %v1172_v21  ;;  %v1440_v32 = vadd.f32 %v2748_v26, %v997_v29 }
 0x1de   : > { %v1473_v27 = vpack.c.bf16 %v1439_v25, %v1438_v24 }
 0x1e0   : > { %1505 = vst [vmem:[%s2761_s15 + $0xe8] sm:$0xff] %v1473_v27  ;;  %v1085_v30 = vpop.f32.mrf.mxu2  ;;  %v909_v35 = vpop.f32.mrf.mxu0 }
 0x1e1   : > { %v1174_v31 = vpop.f32.mrf.mxu3  ;;  %v998_v36 = vpop.f32.mrf.mxu1 }
 0x1e2   : > { %v1175_v33 = vadd.f32 %v1174_v31, %v1085_v30  ;;  %v999_v38 = vadd.f32 %v998_v36, %v909_v35 }
 0x1e4   : > { %v1441_v34 = vadd.f32 %v2751_v28, %v1175_v33  ;;  %v1442_v42 = vadd.f32 %v2748_v26, %v999_v38 }
 0x1e6   : > { %v1474_v37 = vpack.c.bf16 %v1441_v34, %v1440_v32 }
 0x1e8   : > { %1506 = vst [vmem:[%s2761_s15 + $0xf0] sm:$0xff] %v1474_v37  ;;  %v1087_v39 = vpop.f32.mrf.mxu2 }
 0x1e9   : > { %v1176_v40 = vpop.f32.mrf.mxu3 }
 0x1ea   : > { %v1177_v41 = vadd.f32 %v1176_v40, %v1087_v39 }
 0x1ec   : > { %v1443_v43 = vadd.f32 %v2751_v28, %v1177_v41 }
 0x1ee   : > { %v1475_v44 = vpack.c.bf16 %v1443_v43, %v1442_v42 }
 0x1f0   : > { %1507 = vst [vmem:[%s2761_s15 + $0xf8] sm:$0xff] %v1475_v44 }
 0x1f1   : > { %2274 = shalt.err (!%p2271_p8)
}
 0x1f2   : > { %s2402_s10 = smov 128   ;;  %s2403_s15 = smov 384  }
 0x1f3   : > { %s2404_s9 = smov 8  }
 0x1f4   : > { %2021 = dma.vmem_to_hbm [thread:$0]  (%p2596_p3), %s1525_s3, 4096, %s1527_s12, %s1509_s14, %s2402_s10, %s2403_s15, %s2404_s9  }
 0x1f5 PF: > { %s2996_s29 = sld [smem:[#allocation13_spill]]  ;;  %p2038_p10 = scmp.ge.s32.totalorder %s2397_s25, 2 }
 0x1f7   : > { %p2034_p11 = pnand %p2038_p10, %p2603_p5 }
 0x1f9   : > { %p2035_p12 = pneg %p2034_p11 }
 0x1fb   : > { %s1541_s18 = sand.u32 1, %s2996_s29  }
 0x1fc   : > { %s1542_s22 = scalar_lea.sflag [#allocation5], %s1541_s18 }
 0x1fd   : > { %2340 = dma.done.wait (%p2035_p12), %s1542_s22, 4096  }
 0x1fe   : > { %2342 = vsyncadd (%p2035_p12), %s1542_s22, 4294963200  ;;  %s22_s25 = sadd.s32 1, %s2397_s25   ;;  %s2999_s28 = sld [smem:[#allocation14_spill]] }
 0x1ff   : > { %p2904_p13 = scmp.ge.s32.totalorder %s22_s25, 8   ;;  %s3000_s14 = sld [smem:[#allocation23_spill]] }
 0x200   : > { %s3001_s7 = sld [smem:[#allocation21_spill]]  ;;  %s3007_s12 = smov %s2349_s13 }
 0x201   : > { %s3002_s21 = sld [smem:[#allocation15_spill]]  ;;  %s3009_s15 = smov %s2361_s16 }
 0x202   : > { %s3003_s20 = sld [smem:[#allocation22_spill]]  ;;  %s3010_s16 = smov %s2365_s17 }
 0x203   : > { %s3004_s22 = sld [smem:[#allocation18_spill]]  ;;  %s3012_s18 = smov %s2373_s19 }
 0x204   : > { %s3005_s1 = sld [smem:[#allocation19_spill]]  ;;  %s3008_s13 = smov %s2999_s28 }
 0x205   : > { %s3006_s24 = sld [smem:[#allocation20_spill]] }
 0x206   : > { %s3011_s17 = smov %s3001_s7  ;;  %21 = sbr.rel (!%p2904_p13) target bundleno = 15 (0xf), region = 109 }
 0x207   : > { %s3013_s19 = smov %s3002_s21  ;;  %s3014_s21 = smov %s2389_s23 }
 0x20a   : > { %s3015_s23 = smov %s3005_s1 }
 0x20b   :  { %1548 = vsyncpa [#allocation4], 1 }
 0x20c   :  { %1550 = vsyncpa [#allocation4 + $0x1], 1 }
 0x20d   :  { %1551 = vsyncpa [#allocation7], 1 }
 0x20e   :  { %1553 = vsyncpa [#allocation7 + $0x1], 1 }
 0x20f   :  { %1554 = vsyncpa [#allocation5], 1 }
 0x210   :  { %1556 = vsyncpa [#allocation5 + $0x1], 1 }

</bundles_post_ra>
